<compile_context>
chip_gen: v5e
topology: v5e:2x2
jax: 0.10.0
libtpu: 0.0.40
codegen_flags: <defaults>
</compile_context>

<pallas_src>
import functools

import jax
import jax.numpy as jnp
import numpy as np
from jax.experimental import pallas as pl
from jax.experimental.pallas import tpu as pltpu

_LANES = 128
_MAX_BLOCK_ROWS = 512          # ~85%+ of HBM roofline already at 512-row tiles
_MAX_SINGLE_BLOCK_C = 2048     # single class block up to this width
_MAX_BLOCK_COLS = 2048         # class-tile width when C is tiled


def _cdiv(a: int, b: int) -> int:
    return -(-a // b)


def _round_up(x: int, m: int) -> int:
    return ((x + m - 1) // m) * m


def _sublane_granule(*dtypes) -> int:
    # f32 -> 8 rows, bf16 -> 16, int8 -> 32 (sub-32-bit dtypes pack sublanes).
    g = 8
    for dt in dtypes:
        g = max(g, 32 // max(jnp.dtype(dt).itemsize, 1))
    return g


def _vmem_budget():
    """(vmem_limit_bytes, tile_budget_bytes) derived from the local chip."""
    try:
        cap = int(pltpu.get_tpu_info().vmem_capacity_bytes)
    except Exception:
        cap = 64 * 1024 * 1024   # v7x floor; safe everywhere
    limit = min(cap - 8 * 1024 * 1024, 112 * 1024 * 1024)  # compiler headroom
    tile_budget = limit // 2                                # our tiles + temps
    return limit, tile_budget


def _choose_block_cols(C: int, requested=None):
    """Returns (TC, num_class_blocks)."""
    if requested is not None and int(requested) < C:
        tc = max(_LANES, (int(requested) // _LANES) * _LANES)
        return tc, _cdiv(C, tc)
    if C <= _MAX_SINGLE_BLOCK_C:
        return C, 1          # block last dim == full array dim: no 128 pad
    return _MAX_BLOCK_COLS, _cdiv(C, _MAX_BLOCK_COLS)


def _choose_block_rows(N, TC, in_dtype, tgt_dtype, tile_budget, requested=None):
    granule = _sublane_granule(in_dtype, tgt_dtype)
    n_cap = _round_up(N, granule)
    if requested is not None:
        tn = _round_up(min(int(requested), n_cap), granule)
        return max(granule, tn)
    isz = jnp.dtype(in_dtype).itemsize
    tsz = jnp.dtype(tgt_dtype).itemsize
    # 2 pipeline buffers per input tile + ~4 f32-sized intermediates / element.
    bytes_per_row = TC * (2 * (isz + tsz) + 4 * 4)
    tn = tile_budget // max(bytes_per_row, 1)
    # Keep >= ~8 row steps so megacore (v7x) and the DMA pipeline have work.
    steps_cap = _round_up(_cdiv(N, 8), granule)
    tn = min(int(tn), _MAX_BLOCK_ROWS, n_cap, steps_cap)
    return max(granule, (tn // granule) * granule)


def _mlce_kernel(lb_ref, x_ref, t_ref, loss_ref,
                 m_ref, l_ref, st_ref, stx_ref, *, C, TC):
    """One (row-block, class-block) step of the multi-label CE loss.

    Accumulators (per row of the row block, all f32, shape (TN, 1)):
      m_ref   running max of logits
      l_ref   running sum(exp(x - m))
      st_ref  running sum of targets over valid entries
      stx_ref running sum of target * logit over valid entries
    """
    k = pl.program_id(1)
    nk = pl.num_programs(1)

    @pl.when(k == 0)
    def _init():
        m_ref[...] = jnp.full_like(m_ref, -jnp.inf)
        l_ref[...] = jnp.zeros_like(l_ref)
        st_ref[...] = jnp.zeros_like(st_ref)
        stx_ref[...] = jnp.zeros_like(stx_ref)

    x = x_ref[...].astype(jnp.float32)   # (TN, TC)
    t = t_ref[...].astype(jnp.float32)   # (TN, TC)

    # Column-validity mask for the (possibly partial) last class block.
    col = k * TC + jax.lax.broadcasted_iota(jnp.int32, x.shape, 1)
    in_bounds = col < C

    # input[input == +inf] = -inf ; out-of-bounds lanes behave like -inf / 0.
    x = jnp.where((x == jnp.inf) | jnp.logical_not(in_bounds), -jnp.inf, x)
    t = jnp.where(in_bounds, t, jnp.float32(0.0))

    # Optional class re-weighting: x += log(beta)/temp where target == 0
    # (lb_ref holds 0.0 when beta is None -> exact no-op).
    x = x + jnp.where((t == jnp.float32(0.0)) & in_bounds,
                      lb_ref[0, 0], jnp.float32(0.0))

    # --- online softmax denominator: running max / running sum-exp ---------
    m_prev = m_ref[...]
    m_new = jnp.maximum(m_prev, jnp.max(x, axis=1, keepdims=True))
    # Avoid (-inf) - (-inf) = nan when every logit seen so far is -inf.
    m_safe = jnp.where(m_new == -jnp.inf, jnp.float32(0.0), m_new)
    alpha = jnp.exp(m_prev - m_safe)
    l_ref[...] = l_ref[...] * alpha + jnp.sum(jnp.exp(x - m_safe),
                                              axis=1, keepdims=True)
    m_ref[...] = m_new

    # --- numerator: only positive-target, finite-logit entries contribute --
    valid = (t != jnp.float32(0.0)) & jnp.logical_not(jnp.isnan(x) |
                                                      jnp.isinf(x))
    st_ref[...] += jnp.sum(jnp.where(valid, t, jnp.float32(0.0)),
                           axis=1, keepdims=True)
    stx_ref[...] += jnp.sum(jnp.where(valid, t * x, jnp.float32(0.0)),
                            axis=1, keepdims=True)

    @pl.when(k == nk - 1)
    def _finalize():
        lse = m_ref[...] + jnp.log(l_ref[...])
        loss = lse * st_ref[...] - stx_ref[...]
        # All-(-inf) / nan rows -> 0, matching the reference's elementwise
        # inf/nan zeroing of -t * log_probs.
        loss = jnp.where(jnp.isnan(loss) | jnp.isinf(loss),
                         jnp.float32(0.0), loss)
        loss_ref[...] = loss.astype(loss_ref.dtype)


class MultiLabelCrossEntropyLoss:
    """Pallas/TPU port of the PyTorch MultiLabelCrossEntropyLoss module."""

    def __init__(self, eps: float = 0, alpha: float = 0.2, topk_pos: int = -1,
                 temp: float = 1.0, block_rows: int = None,
                 block_cols: int = None, **kwargs):
        # eps / alpha / topk_pos stored for parity; unused in forward (as in
        # the reference PyTorch module).
        self.eps = eps
        self.alpha = alpha
        self.topk_pos = topk_pos
        self.temp = temp
        self.block_rows = block_rows   # None -> auto-size against VMEM
        self.block_cols = block_cols   # None -> single class block if C small

    def __repr__(self):
        return "MultiLabelCrossEntropyLoss(eps={}, alpha={})".format(
            self.eps, self.alpha)

    def __call__(self, inputs: jnp.ndarray, targets: jnp.ndarray,
                 reduction: bool = True, beta=None) -> jnp.ndarray:
        N, C = inputs.shape
        assert targets.shape == (N, C)

        TC, kc = _choose_block_cols(C, self.block_cols)
        vmem_limit, tile_budget = _vmem_budget()
        TN = _choose_block_rows(N, TC, inputs.dtype, targets.dtype,
                                tile_budget, self.block_rows)
        grid = (_cdiv(N, TN), kc)

        # beta handled as a runtime SMEM scalar: log(beta)/temp (0.0 => no-op).
        if beta is None:
            lb = jnp.zeros((1, 1), jnp.float32)
        else:
            lb = (jnp.log(jnp.asarray(beta, dtype=jnp.float32)) /
                  jnp.float32(self.temp)).reshape(1, 1)

        kernel = functools.partial(_mlce_kernel, C=C, TC=TC)

        loss_rows = pl.pallas_call(
            kernel,
            out_shape=jax.ShapeDtypeStruct((N, 1), jnp.float32),
            grid=grid,
            in_specs=[
                pl.BlockSpec(memory_space=pltpu.MemorySpace.SMEM),  # lb (1,1)
                pl.BlockSpec((TN, TC), lambda i, k: (i, k)),        # logits
                pl.BlockSpec((TN, TC), lambda i, k: (i, k)),        # targets
            ],
            out_specs=pl.BlockSpec((TN, 1), lambda i, k: (i, 0)),
            scratch_shapes=[pltpu.VMEM((TN, 1), jnp.float32)
                            for _ in range(4)],
            compiler_params=pltpu.CompilerParams(
                dimension_semantics=("parallel", "arbitrary"),
                vmem_limit_bytes=vmem_limit,
            ),
        )(lb, inputs, targets)

        loss = loss_rows[:, 0]
        if reduction:
            non_zero_cnt = jnp.maximum(
                jnp.sum((loss != 0.0).astype(jnp.float32)), jnp.float32(1.0))
            return jnp.sum(loss) / non_zero_cnt
        return loss


def _reference(inputs, targets, reduction=True, beta=None, temp=1.0):
    """Pure-JAX reference mirroring the PyTorch forward for sanity checks."""
    x = inputs.astype(jnp.float32)
    x = jnp.where(x == jnp.inf, -jnp.inf, x)
    t = targets.astype(jnp.float32)
    if beta is not None:
        w = jnp.where(t == 0.0, jnp.float32(beta), jnp.float32(1.0))
        x = x + jnp.log(w) / jnp.float32(temp)
    log_probs = jax.nn.log_softmax(x, axis=1)
    loss_ = -t * log_probs
    loss_ = jnp.where(jnp.isnan(loss_) | jnp.isinf(loss_), 0.0, loss_)
    loss = jnp.sum(loss_, axis=1)
    if reduction:
        non_zero_cnt = jnp.maximum(jnp.sum(loss != 0.0), 1)
        return jnp.sum(loss) / non_zero_cnt
    return loss


if __name__ == "__main__":
    key = jax.random.PRNGKey(0)
    k1, k2, k3, k4, k5, k6 = jax.random.split(key, 6)

    loss_fn = MultiLabelCrossEntropyLoss(eps=0, alpha=0.2, temp=1.0)

    # Case 1: small f32 (N=16, C=16) -- native (unpadded) class dim.
    x32 = jax.random.normal(k1, (16, 16), dtype=jnp.float32)
    t32 = jax.random.bernoulli(k2, 0.3, (16, 16)).astype(jnp.float32)

    out = jax.block_until_ready(loss_fn(x32, t32, reduction=True))
    out_rows = jax.block_until_ready(loss_fn(x32, t32, reduction=False))
    out_beta = jax.block_until_ready(loss_fn(x32, t32, reduction=True,
                                             beta=0.5))
    np.testing.assert_allclose(np.asarray(out),
                               np.asarray(_reference(x32, t32, True)),
                               rtol=1e-4, atol=1e-4)
    np.testing.assert_allclose(np.asarray(out_rows),
                               np.asarray(_reference(x32, t32, False)),
                               rtol=1e-4, atol=1e-4)
    np.testing.assert_allclose(np.asarray(out_beta),
                               np.asarray(_reference(x32, t32, True,
                                                     beta=0.5)),
                               rtol=1e-4, atol=1e-4)

    # Case 2: bf16 inputs/targets passed in native dtype (halves HBM traffic).
    xb = jax.random.normal(k3, (32, 48), dtype=jnp.float32).astype(jnp.bfloat16)
    tb = jax.random.bernoulli(k4, 0.3, (32, 48)).astype(jnp.bfloat16)
    out_bf16 = jax.block_until_ready(loss_fn(xb, tb, reduction=True))
    np.testing.assert_allclose(np.asarray(out_bf16),
                               np.asarray(_reference(xb, tb, True)),
                               rtol=1e-4, atol=1e-4)

    # Case 3: class-tiled online-softmax path (forced block_cols=128, C=200,
    # partial last class block) + inf/nan logit zeroing edge cases.
    N3, C3 = 24, 200
    xe = jax.random.normal(k5, (N3, C3), dtype=jnp.float32)
    te = jax.random.bernoulli(k6, 0.3, (N3, C3)).astype(jnp.float32)
    xe = xe.at[0, 0].set(jnp.inf)     # +inf logit on a positive target
    te = te.at[0, 0].set(1.0)
    xe = xe.at[1, :].set(jnp.nan)     # whole-row nan -> row loss must be 0

    loss_fn_tiled = MultiLabelCrossEntropyLoss(eps=0, alpha=0.2, temp=1.0,
                                               block_rows=8, block_cols=128)
    out_t = jax.block_until_ready(loss_fn_tiled(xe, te, reduction=True))
    out_t_rows = jax.block_until_ready(loss_fn_tiled(xe, te, reduction=False))
    out_t_beta = jax.block_until_ready(loss_fn_tiled(xe, te, reduction=True,
                                                     beta=0.25))
    np.testing.assert_allclose(np.asarray(out_t),
                               np.asarray(_reference(xe, te, True)),
                               rtol=1e-4, atol=1e-4)
    np.testing.assert_allclose(np.asarray(out_t_rows),
                               np.asarray(_reference(xe, te, False)),
                               rtol=1e-4, atol=1e-4)
    np.testing.assert_allclose(np.asarray(out_t_beta),
                               np.asarray(_reference(xe, te, True, beta=0.25)),
                               rtol=1e-4, atol=1e-4)

    print("KERNEL_OK")
</pallas_src>

<mosaic_0001>
module attributes {stable_mosaic.version = 11 : i64} {
  func.func @_mlce_kernel(%arg0: i32, %arg1: i32, %arg2: memref<1x1xf32, #tpu.memory_space<smem>>, %arg3: memref<8x16xf32, #tpu.memory_space<vmem>>, %arg4: memref<8x16xf32, #tpu.memory_space<vmem>>, %arg5: memref<8x1xf32, #tpu.memory_space<vmem>>, %arg6: memref<8x1xf32, #tpu.memory_space<vmem>>, %arg7: memref<8x1xf32, #tpu.memory_space<vmem>>, %arg8: memref<8x1xf32, #tpu.memory_space<vmem>>, %arg9: memref<8x1xf32, #tpu.memory_space<vmem>>) attributes {dimension_semantics = [#tpu.dimension_semantics<parallel>, #tpu.dimension_semantics<arbitrary>], iteration_bounds = array<i64: 2, 1>, scalar_prefetch = 0 : i64, scratch_operands = 4 : i64, tpu.core_type = #tpu.core_type<tc>, window_params = [{transform_indices = @transform_0, window_bounds = array<i64: 1, 1>}, {transform_indices = @transform_1, window_bounds = array<i64: 8, 16>}, {transform_indices = @transform_2, window_bounds = array<i64: 8, 16>}, {transform_indices = @transform_3, window_bounds = array<i64: 8, 1>}]} {
    %c0_i32 = arith.constant 0 : i32
    %0 = arith.cmpi eq, %arg1, %c0_i32 : i32
    %1 = arith.extui %0 : i1 to i32
    %c0_i32_0 = arith.constant 0 : i32
    %2 = arith.cmpi ne, %1, %c0_i32_0 : i32
    scf.if %2 {
      %cst_41 = arith.constant 0xFF800000 : f32
      %74 = vector.broadcast %cst_41 : f32 to vector<8x1xf32>
      %c0_42 = arith.constant 0 : index
      %c0_43 = arith.constant 0 : index
      %75 = vector.load %arg6[%c0_42, %c0_43] : memref<8x1xf32, #tpu.memory_space<vmem>>, vector<8x1xf32>
      tpu.vector_store %arg6[%c0_42, %c0_43], %74 {strides = array<i32>} : memref<8x1xf32, #tpu.memory_space<vmem>>, vector<8x1xf32>,
      %cst_44 = arith.constant 0.000000e+00 : f32
      %76 = vector.broadcast %cst_44 : f32 to vector<8x1xf32>
      %c0_45 = arith.constant 0 : index
      %c0_46 = arith.constant 0 : index
      %77 = vector.load %arg7[%c0_45, %c0_46] : memref<8x1xf32, #tpu.memory_space<vmem>>, vector<8x1xf32>
      tpu.vector_store %arg7[%c0_45, %c0_46], %76 {strides = array<i32>} : memref<8x1xf32, #tpu.memory_space<vmem>>, vector<8x1xf32>,
      %cst_47 = arith.constant 0.000000e+00 : f32
      %78 = vector.broadcast %cst_47 : f32 to vector<8x1xf32>
      %c0_48 = arith.constant 0 : index
      %c0_49 = arith.constant 0 : index
      %79 = vector.load %arg8[%c0_48, %c0_49] : memref<8x1xf32, #tpu.memory_space<vmem>>, vector<8x1xf32>
      tpu.vector_store %arg8[%c0_48, %c0_49], %78 {strides = array<i32>} : memref<8x1xf32, #tpu.memory_space<vmem>>, vector<8x1xf32>,
      %cst_50 = arith.constant 0.000000e+00 : f32
      %80 = vector.broadcast %cst_50 : f32 to vector<8x1xf32>
      %c0_51 = arith.constant 0 : index
      %c0_52 = arith.constant 0 : index
      %81 = vector.load %arg9[%c0_51, %c0_52] : memref<8x1xf32, #tpu.memory_space<vmem>>, vector<8x1xf32>
      tpu.vector_store %arg9[%c0_51, %c0_52], %80 {strides = array<i32>} : memref<8x1xf32, #tpu.memory_space<vmem>>, vector<8x1xf32>,
    } else {
    }
    %c0 = arith.constant 0 : index
    %c0_1 = arith.constant 0 : index
    %3 = vector.load %arg3[%c0, %c0_1] : memref<8x16xf32, #tpu.memory_space<vmem>>, vector<8x16xf32>
    %c0_2 = arith.constant 0 : index
    %c0_3 = arith.constant 0 : index
    %4 = vector.load %arg4[%c0_2, %c0_3] : memref<8x16xf32, #tpu.memory_space<vmem>>, vector<8x16xf32>
    %c16_i32 = arith.constant 16 : i32
    %5 = arith.muli %arg1, %c16_i32 : i32
    %6 = tpu.iota {dimensions = array<i32: 1>} : vector<8x16xi32>
    %7 = vector.broadcast %5 : i32 to vector<8x16xi32>
    %8 = arith.addi %7, %6 : vector<8x16xi32>
    %c16_i32_4 = arith.constant 16 : i32
    %9 = vector.broadcast %c16_i32_4 : i32 to vector<8x16xi32>
    %10 = arith.cmpi slt, %8, %9 : vector<8x16xi32>
    %cst = arith.constant 0x7F800000 : f32
    %11 = vector.broadcast %cst : f32 to vector<8x16xf32>
    %12 = arith.cmpf oeq, %3, %11 : vector<8x16xf32>
    %cst_5 = arith.constant dense<true> : vector<8x16xi1>
    %13 = arith.xori %10, %cst_5 : vector<8x16xi1>
    %14 = arith.ori %12, %13 : vector<8x16xi1>
    %cst_6 = arith.constant 0xFF800000 : f32
    %15 = vector.broadcast %cst_6 : f32 to vector<8x16xf32>
    %16 = arith.select %14, %15, %3 : vector<8x16xi1>, vector<8x16xf32>
    %cst_7 = arith.constant 0.000000e+00 : f32
    %17 = vector.broadcast %cst_7 : f32 to vector<8x16xf32>
    %18 = arith.select %10, %4, %17 : vector<8x16xi1>, vector<8x16xf32>
    %cst_8 = arith.constant 0.000000e+00 : f32
    %19 = vector.broadcast %cst_8 : f32 to vector<8x16xf32>
    %20 = arith.cmpf oeq, %18, %19 : vector<8x16xf32>
    %21 = arith.andi %20, %10 : vector<8x16xi1>
    %c0_9 = arith.constant 0 : index
    %c0_10 = arith.constant 0 : index
    %22 = memref.load %arg2[%c0_9, %c0_10] : memref<1x1xf32, #tpu.memory_space<smem>>
    %cst_11 = arith.constant 0.000000e+00 : f32
    %23 = vector.broadcast %22 : f32 to vector<8x16xf32>
    %24 = vector.broadcast %cst_11 : f32 to vector<8x16xf32>
    %25 = arith.select %21, %23, %24 : vector<8x16xi1>, vector<8x16xf32>
    %26 = arith.addf %16, %25 : vector<8x16xf32>
    %c0_12 = arith.constant 0 : index
    %c0_13 = arith.constant 0 : index
    %27 = vector.load %arg6[%c0_12, %c0_13] : memref<8x1xf32, #tpu.memory_space<vmem>>, vector<8x1xf32>
    %cst_14 = arith.constant dense<0xFF800000> : vector<8xf32>
    %28 = vector.multi_reduction <maximumf>, %26, %cst_14 [1] : vector<8x16xf32> to vector<8xf32>
    %29 = vector.shape_cast %28 : vector<8xf32> to vector<8x1xf32>
    %30 = arith.maximumf %27, %29 : vector<8x1xf32>
    %cst_15 = arith.constant 0xFF800000 : f32
    %31 = vector.broadcast %cst_15 : f32 to vector<8x1xf32>
    %32 = arith.cmpf oeq, %30, %31 : vector<8x1xf32>
    %cst_16 = arith.constant 0.000000e+00 : f32
    %33 = vector.broadcast %cst_16 : f32 to vector<8x1xf32>
    %34 = arith.select %32, %33, %30 : vector<8x1xi1>, vector<8x1xf32>
    %35 = arith.subf %27, %34 : vector<8x1xf32>
    %36 = math.exp %35 : vector<8x1xf32>
    %c0_17 = arith.constant 0 : index
    %c0_18 = arith.constant 0 : index
    %37 = vector.load %arg7[%c0_17, %c0_18] : memref<8x1xf32, #tpu.memory_space<vmem>>, vector<8x1xf32>
    %38 = arith.mulf %37, %36 : vector<8x1xf32>
    %39 = vector.broadcast %34 : vector<8x1xf32> to vector<8x16xf32>
    %40 = arith.subf %26, %39 : vector<8x16xf32>
    %41 = math.exp %40 : vector<8x16xf32>
    %cst_19 = arith.constant dense<0.000000e+00> : vector<8xf32>
    %42 = vector.multi_reduction <add>, %41, %cst_19 [1] : vector<8x16xf32> to vector<8xf32>
    %43 = vector.shape_cast %42 : vector<8xf32> to vector<8x1xf32>
    %44 = arith.addf %38, %43 : vector<8x1xf32>
    %c0_20 = arith.constant 0 : index
    %c0_21 = arith.constant 0 : index
    %45 = vector.load %arg7[%c0_20, %c0_21] : memref<8x1xf32, #tpu.memory_space<vmem>>, vector<8x1xf32>
    tpu.vector_store %arg7[%c0_20, %c0_21], %44 {strides = array<i32>} : memref<8x1xf32, #tpu.memory_space<vmem>>, vector<8x1xf32>,
    %c0_22 = arith.constant 0 : index
    %c0_23 = arith.constant 0 : index
    %46 = vector.load %arg6[%c0_22, %c0_23] : memref<8x1xf32, #tpu.memory_space<vmem>>, vector<8x1xf32>
    tpu.vector_store %arg6[%c0_22, %c0_23], %30 {strides = array<i32>} : memref<8x1xf32, #tpu.memory_space<vmem>>, vector<8x1xf32>,
    %cst_24 = arith.constant 0.000000e+00 : f32
    %47 = vector.broadcast %cst_24 : f32 to vector<8x16xf32>
    %48 = arith.cmpf one, %18, %47 : vector<8x16xf32>
    %49 = arith.cmpf one, %26, %26 : vector<8x16xf32>
    %50 = math.absf %26 : vector<8x16xf32>
    %cst_25 = arith.constant 0x7F800000 : f32
    %51 = vector.broadcast %cst_25 : f32 to vector<8x16xf32>
    %52 = arith.cmpf oeq, %50, %51 : vector<8x16xf32>
    %53 = arith.ori %49, %52 : vector<8x16xi1>
    %cst_26 = arith.constant dense<true> : vector<8x16xi1>
    %54 = arith.xori %53, %cst_26 : vector<8x16xi1>
    %55 = arith.andi %48, %54 : vector<8x16xi1>
    %c0_27 = arith.constant 0 : index
    %c0_28 = arith.constant 0 : index
    %56 = vector.load %arg8[%c0_27, %c0_28] : memref<8x1xf32, #tpu.memory_space<vmem>>, vector<8x1xf32>
    %cst_29 = arith.constant 0.000000e+00 : f32
    %57 = vector.broadcast %cst_29 : f32 to vector<8x16xf32>
    %58 = arith.select %55, %18, %57 : vector<8x16xi1>, vector<8x16xf32>
    %cst_30 = arith.constant dense<0.000000e+00> : vector<8xf32>
    %59 = vector.multi_reduction <add>, %58, %cst_30 [1] : vector<8x16xf32> to vector<8xf32>
    %60 = vector.shape_cast %59 : vector<8xf32> to vector<8x1xf32>
    %61 = arith.addf %56, %60 : vector<8x1xf32>
    %c0_31 = arith.constant 0 : index
    %c0_32 = arith.constant 0 : index
    %62 = vector.load %arg8[%c0_31, %c0_32] : memref<8x1xf32, #tpu.memory_space<vmem>>, vector<8x1xf32>
    tpu.vector_store %arg8[%c0_31, %c0_32], %61 {strides = array<i32>} : memref<8x1xf32, #tpu.memory_space<vmem>>, vector<8x1xf32>,
    %c0_33 = arith.constant 0 : index
    %c0_34 = arith.constant 0 : index
    %63 = vector.load %arg9[%c0_33, %c0_34] : memref<8x1xf32, #tpu.memory_space<vmem>>, vector<8x1xf32>
    %64 = arith.mulf %18, %26 : vector<8x16xf32>
    %cst_35 = arith.constant 0.000000e+00 : f32
    %65 = vector.broadcast %cst_35 : f32 to vector<8x16xf32>
    %66 = arith.select %55, %64, %65 : vector<8x16xi1>, vector<8x16xf32>
    %cst_36 = arith.constant dense<0.000000e+00> : vector<8xf32>
    %67 = vector.multi_reduction <add>, %66, %cst_36 [1] : vector<8x16xf32> to vector<8xf32>
    %68 = vector.shape_cast %67 : vector<8xf32> to vector<8x1xf32>
    %69 = arith.addf %63, %68 : vector<8x1xf32>
    %c0_37 = arith.constant 0 : index
    %c0_38 = arith.constant 0 : index
    %70 = vector.load %arg9[%c0_37, %c0_38] : memref<8x1xf32, #tpu.memory_space<vmem>>, vector<8x1xf32>
    tpu.vector_store %arg9[%c0_37, %c0_38], %69 {strides = array<i32>} : memref<8x1xf32, #tpu.memory_space<vmem>>, vector<8x1xf32>,
    %c0_i32_39 = arith.constant 0 : i32
    %71 = arith.cmpi eq, %arg1, %c0_i32_39 : i32
    %72 = arith.extui %71 : i1 to i32
    %c0_i32_40 = arith.constant 0 : i32
    %73 = arith.cmpi ne, %72, %c0_i32_40 : i32
    scf.if %73 {
      %c0_41 = arith.constant 0 : index
      %c0_42 = arith.constant 0 : index
      %74 = vector.load %arg6[%c0_41, %c0_42] : memref<8x1xf32, #tpu.memory_space<vmem>>, vector<8x1xf32>
      %c0_43 = arith.constant 0 : index
      %c0_44 = arith.constant 0 : index
      %75 = vector.load %arg7[%c0_43, %c0_44] : memref<8x1xf32, #tpu.memory_space<vmem>>, vector<8x1xf32>
      %76 = math.log %75 : vector<8x1xf32>
      %77 = arith.addf %74, %76 : vector<8x1xf32>
      %c0_45 = arith.constant 0 : index
      %c0_46 = arith.constant 0 : index
      %78 = vector.load %arg8[%c0_45, %c0_46] : memref<8x1xf32, #tpu.memory_space<vmem>>, vector<8x1xf32>
      %79 = arith.mulf %77, %78 : vector<8x1xf32>
      %c0_47 = arith.constant 0 : index
      %c0_48 = arith.constant 0 : index
      %80 = vector.load %arg9[%c0_47, %c0_48] : memref<8x1xf32, #tpu.memory_space<vmem>>, vector<8x1xf32>
      %81 = arith.subf %79, %80 : vector<8x1xf32>
      %82 = arith.cmpf one, %81, %81 : vector<8x1xf32>
      %83 = math.absf %81 : vector<8x1xf32>
      %cst_49 = arith.constant 0x7F800000 : f32
      %84 = vector.broadcast %cst_49 : f32 to vector<8x1xf32>
      %85 = arith.cmpf oeq, %83, %84 : vector<8x1xf32>
      %86 = arith.ori %82, %85 : vector<8x1xi1>
      %cst_50 = arith.constant 0.000000e+00 : f32
      %87 = vector.broadcast %cst_50 : f32 to vector<8x1xf32>
      %88 = arith.select %86, %87, %81 : vector<8x1xi1>, vector<8x1xf32>
      %c0_51 = arith.constant 0 : index
      %c0_52 = arith.constant 0 : index
      %89 = vector.load %arg5[%c0_51, %c0_52] : memref<8x1xf32, #tpu.memory_space<vmem>>, vector<8x1xf32>
      tpu.vector_store %arg5[%c0_51, %c0_52], %88 {strides = array<i32>} : memref<8x1xf32, #tpu.memory_space<vmem>>, vector<8x1xf32>,
    } else {
    }
    return
  }
  func.func @transform_0(%arg0: i32, %arg1: i32) -> (i32, i32) {
    %c0_i32 = arith.constant 0 : i32
    %c0_i32_0 = arith.constant 0 : i32
    %c0_i32_1 = arith.constant 0 : i32
    return %c0_i32, %c0_i32_0 : i32, i32
  }
  func.func @transform_1(%arg0: i32, %arg1: i32) -> (i32, i32) {
    %c0_i32 = arith.constant 0 : i32
    return %arg0, %arg1 : i32, i32
  }
  func.func @transform_2(%arg0: i32, %arg1: i32) -> (i32, i32) {
    %c0_i32 = arith.constant 0 : i32
    return %arg0, %arg1 : i32, i32
  }
  func.func @transform_3(%arg0: i32, %arg1: i32) -> (i32, i32) {
    %c0_i32 = arith.constant 0 : i32
    %c0_i32_0 = arith.constant 0 : i32
    return %arg0, %c0_i32 : i32, i32
  }
}

</mosaic_0001>

<bundles_post_ra>
// kernel: tpu_custom_call.1
= control target key start
LH: loop header
LB: loop body
LE: loop exit
PB: predicated region body
PF: predicated region fallthrough
CT: control target
= control target key end

     0   :  { %s778_s0 = inlined_call_operand.<no memory space> [shape: f32[1,1], index: 0, kind: input, shape index: {}]   ;;  %s779_s1 = inlined_call_operand.hbm [shape: f32[16,16], index: 1, kind: input, shape index: {}]   ;;  %s780_s2 = inlined_call_operand.hbm [shape: f32[16,16], index: 2, kind: input, shape index: {}]   ;;  %s781_s3 = inlined_call_operand.vmem [shape: f32[16,1], index: 3, kind: output, shape index: {}]  }
   0x1   :  { %8 = sst [smem:[#allocation6]] %s778_s0 }
   0x2   :  { %9 = vsyncpa [#allocation8], 0 }
   0x3   :  { %11 = vsyncpa [#allocation8 + $0x1], 0 }
   0x4   :  { %12 = vsyncpa [#allocation10], 0 }
   0x5   :  { %14 = vsyncpa [#allocation10 + $0x1], 0  ;;  %s668_s14 = smov 0   ;;  %s670_s15 = smov 0  }
   0x6   :  { %s672_s16 = smov 0   ;;  %s674_s17 = smov 0  }
   0x7   :  { %s676_s18 = smov 0   ;;  %s678_s19 = smov 0  }
   0x8 LB: > { %s440_s0 = sadd.s32 4294967295, %s639_s19   ;;  %s32_s20 = sadd.s32 1, %s635_s18  ;;  %s639_s19 = sphi %s678_s19, %s20_s19   ;;  %s635_s18 = sphi %s676_s18, %s788_s18   ;;  %s631_s17 = sphi %s674_s17, %s787_s17   ;;  %s627_s16 = sphi %s672_s16, %s786_s16   ;;  %s623_s15 = sphi %s670_s15, %s785_s15   ;;  %s619_s14 = sphi %s668_s14, %s784_s14  }
   0x9   : > { %p34_p0 = scmp.ge.s32.totalorder %s32_s20, 2  ;;  %s62_s21 = sadd.s32 1, %s627_s16 }
   0xa   : > { %p69_p1 = scmp.ne.s32.totalorder %s627_s16, %s623_s15  ;;  %p70_p2 = scmp.eq.s32.totalorder %s639_s19, 0 }
   0xb   : > { %s790_s20 = smov (%p34_p0, %s32_s20), 0  ;;  %p75_p4 = scmp.ne.s32.totalorder %s623_s15, %s619_s14 }
   0xc   : > { %p704_p3 = por %p70_p2, %p69_p1  ;;  %s57_s23 = ssub.s32 %s635_s18, %s790_s20 }
   0xd   : > { %p76_p5 = scmp.eq.s32.totalorder %s440_s0, 0  ;;  %p60_p6 = scmp.eq.s32.totalorder %s57_s23, 0 }
   0xe   : > { %p465_p8 = scmp.lt.s32.totalorder %s639_s19, 2  ;;  %s156_s26 = sand.u32 1, %s627_s16  }
   0xf   : > { %p711_p7 = por %p76_p5, %p75_p4  ;;  %s445_s27 = sshll.u32 %s635_s18, 3 }
  0x10   : > { %s717_s25 = scalar_select %p60_p6, %s627_s16, %s62_s21  }
  0x11   : > { %s444_s28 = sshll.u32 %s156_s26, 3  ;;  %s165_s4 = scalar_lea.hbm %s779_s1, %s445_s27 }
  0x12   : > { %s167_s5 = sshll.u32 %s165_s4, 4  ;;  %s160_s6 = scalar_lea.vmem [#allocation7], %s444_s28  ;;  %s168_s5 = int_to_ptr.hbm [resolvable:$true] %s167_s5 }
  0x13   : > { %s169_s7 = sshll.u32 %s160_s6, 4  ;;  %p459_p9 = pnand %p465_p8, %p704_p3  ;;  %s170_s7 = int_to_ptr.vmem [resolvable:$true] %s169_s7 }
  0x14   : > { %p448_p10 = scmp.ge.s32.totalorder %s639_s19, 1  ;;  %p194_p11 = scmp.lt.s32.totalorder %s639_s19, 3 }
  0x15   : > { %s157_s8 = scalar_lea.sflag [#allocation8], %s156_s26  ;;  %s185_s11 = scalar_lea.hbm %s780_s2, %s445_s27 }
  0x16   : > { %461 = dma.hbm_to_vmem [thread:$0]  (!%p459_p9), %s168_s5, 128, %s170_s7, %s157_s8  }
  0x17   : > { %p195_p12 = pnand %p448_p10, %p194_p11  ;;  %s187_s12 = sshll.u32 %s185_s11, 4  ;;  %s188_s12 = int_to_ptr.hbm [resolvable:$true] %s187_s12 }
  0x18   : > { %s180_s13 = scalar_lea.vmem [#allocation9], %s444_s28  ;;  %s177_s0 = scalar_lea.sflag [#allocation10], %s156_s26 }
  0x19   : > { %s189_s14 = sshll.u32 %s180_s13, 4  ;;  %198 = sbr.rel (%p195_p12) target bundleno = 439 (0x1b7), region = 32  ;;  %s190_s14 = int_to_ptr.vmem [resolvable:$true] %s189_s14 }
  0x1a   : > { %464 = dma.hbm_to_vmem [thread:$0]  (!%p459_p9), %s188_s12, 128, %s190_s14, %s177_s0  }
  0x1b   : > { %s200_s21 = sand.u32 (!%p195_p12), 1, %s623_s15  }
  0x1c   : > { %s449_s22 = sshll.u32 (!%p195_p12), %s200_s21, 3  ;;  %s201_s23 = scalar_lea.sflag (!%p195_p12), [#allocation8], %s200_s21 }
  0x1d   : > { %s204_s29 = scalar_lea.vmem (!%p195_p12), [#allocation7], %s449_s22 }
  0x1e   : > { %610 = dma.done.wait (%p711_p7), %s201_s23, 128  }
  0x1f   : > { %612 = vsyncadd (%p711_p7), %s201_s23, 4294967168  ;;  %s211_s27 = scalar_lea.sflag [#allocation10], %s200_s21  ;;  %s214_s28 = scalar_lea.vmem [#allocation9], %s449_s22 }
  0x20   : > { %614 = dma.done.wait (%p711_p7), %s211_s27, 128  }
  0x21   : > { %616 = vsyncadd (%p711_p7), %s211_s27, 4294967168  ;;  %v258_v0 = vlaneseq  ;;  %vm250_vm0 = vcmask 7168   ;;  %s270_s26 = sld [smem:[#allocation6]]  ;;  %v641_v2 = vmov -inf   ;;  %vm642_vm2 = vmmov 1   ;;  %v255_v3 = vld [vmem:[%s204_s29] sm:$0xff] }
  0x22   : > { %251 = vst.msk [vmem:[#allocation2] sm:$0xff] %vm250_vm0, %v641_v2  ;;  %v256_v4 = vld [vmem:[%s214_s28] sm:$0xff]  ;;  %vm263_vm4 = vcmp.eq.f32.partialorder %v255_v3, inf  ;;  %vm275_vm8 = vcmask 130048   ;;  %v643_v11 = vmov 0   ;;  %v644_v12 = vmov 0.0  }
  0x23   : > { %v259_v1 = vand.u32 127, %v258_v0  ;;  %518 = vset.pattern.permute.xlu0 %v643_v11  ;;  %252 = vst.msk [vmem:[#allocation3] sm:$0xff] %vm250_vm0, %v644_v12  ;;  %p242_p13 = scmp.lt.s32.totalorder %s631_s17, 1 }
  0x24   : > { %253 = vst.msk [vmem:[#allocation4] sm:$0xff] %vm250_vm0, %v644_v12 }
  0x25   : > { %vm262_vm1 = vcmp.lt.s32.totalorder %v259_v1, 16  ;;  %254 = vst.msk [vmem:[#allocation5] sm:$0xff] %vm250_vm0, %v644_v12  ;;  %s792_s17 = smov (!%p242_p13, %s631_s17), 1 }
  0x26   : > { %vm264_vm3 = vmxor %vm262_vm1, %vm642_vm2  ;;  %v267_v5 = vsel %vm262_vm1, %v256_v4, 0.0  ;;  %s451_s24 = sshll.u32 %s792_s17, 3 }
  0x27   : > { %v271_v6 = vstv %s270_s26  ;;  %vm265_vm5 = vmor %vm263_vm4, %vm264_vm3  ;;  %vm268_vm6 = vcmp.eq.f32.partialorder %v267_v5, 0.0  ;;  %vm302_vm13 = vcmp.ne.f32.partialorder %v267_v5, 0.0  ;;  %s245_s5 = scalar_lea.vmem %s781_s3, %s451_s24 }
  0x28   : > { %v266_v7 = vsel %vm265_vm5, -inf, %v255_v3  ;;  %vm269_vm7 = vmand %vm268_vm6, %vm262_vm1 }
  0x29   : > { %v272_v8 = vsel %vm269_vm7, %v271_v6, 0.0  ;;  %v274_v13 = vld [vmem:[#allocation2] sm:$0xff] }
  0x2a   : > { %v273_v9 = vadd.f32 %v272_v8, %v266_v7  ;;  %v285_v34 = vld [vmem:[#allocation3] sm:$0xff] }
  0x2b   : > { %v309_v38 = vld [vmem:[#allocation4] sm:$0xff] }
  0x2c   : > { %v276_v10 = vsel %vm275_vm8, %v273_v9, -inf  ;;  %vm303_vm10 = vcmp.ne.f32.partialorder %v273_v9, %v273_v9  ;;  %v304_v18 = vand.u32 2147483647, %v273_v9  ;;  %v317_v19 = vmul.f32 %v273_v9, %v267_v5  ;;  %v316_v30 = vld [vmem:[#allocation5] sm:$0xff] }
  0x2d   : > { %277 = vmax.xlane.f32.xlu0 %v276_v10 }
  0x2e   : > { %vm305_vm11 = vcmp.eq.f32.partialorder %v304_v18, inf }
  0x2f   : > { %vm306_vm12 = vmor %vm303_vm10, %vm305_vm11 }
  0x30   : > { %vm307_vm14 = vmxor %vm306_vm12, %vm642_vm2 }
  0x31   : > { %vm308_vm15 = vmand %vm302_vm13, %vm307_vm14 }
  0x32   : > { %v318_v20 = vsel %vm308_vm15, %v317_v19, 0.0  ;;  %v310_v27 = vsel %vm308_vm15, %v267_v5, 0.0 }
  0x33   : > { %v319_v21 = vsel %vm275_vm8, %v318_v20, 0.0  ;;  %v311_v28 = vsel %vm275_vm8, %v310_v27, 0.0 }
  0x34   : > { %320 = vadd.xlane.f32.xlu2 %v319_v21 }
  0xa0   : > { %v278_v14 = vpop.xlane.xlu0 %277 }
  0xa1   : > { %v279_v15 = vmax.f32 %v274_v13, %v278_v14 }
  0xa3   : > { %301 = vst.msk [vmem:[#allocation2] sm:$0xff] %vm250_vm0, %v279_v15  ;;  %vm280_vm9 = vcmp.eq.f32.partialorder %v279_v15, -inf }
  0xa4   : > { %v281_v16 = vsel %vm280_vm9, 0.0, %v279_v15 }
  0xa5   : > { %289 = vperm.xlu0 %518, %v281_v16   ;;  %v282_v17 = vsub.f32 %v274_v13, %v281_v16 }
  0xa7   : > { %v321_v29 = vpop.xlane.xlu2 %320  ;;  %v283_v32 = vmul.f32 1.442695, %v282_v17 }
  0xa8   : > { %v322_v31 = vadd.f32 %v321_v29, %v316_v30 }
  0xaa   : > { %323 = vst.msk [vmem:[#allocation5] sm:$0xff] %vm250_vm0, %v322_v31  ;;  %v327_v44 = vld [vmem:[#allocation2] sm:$0xff] }
  0xb1   : > { %v334_v47 = vld [vmem:[#allocation5] sm:$0xff] }
 0x117   : > { %v290_v22 = vpop.permute.xlu0 %289 }
 0x118   : > { %v292_v23 = vsub.f32 %v273_v9, %v290_v22 }
 0x11a   : > { %v293_v24 = vmul.f32 1.442695, %v292_v23 }
 0x11c   : > { %519 = vpow2.f32 %v293_v24 }
 0x11d   : > { %521 = vpow2.f32 %v283_v32 }
 0x122   : > { %v520_v25 = vpop.eup %519 }
 0x123   : > { %v295_v26 = vsel %vm275_vm8, %v520_v25, 0.0  ;;  %v522_v33 = vpop.eup %521 }
 0x124   : > { %296 = vadd.xlane.f32.xlu1 %v295_v26  ;;  %v286_v35 = vmul.f32 %v522_v33, %v285_v34 }
 0x12c   : > { %312 = vadd.xlane.f32.xlu1 %v311_v28 }
 0x197   : > { %v297_v36 = vpop.xlane.xlu1 %296 }
 0x198   : > { %v298_v37 = vadd.f32 %v297_v36, %v286_v35 }
 0x19a   : > { %300 = vst.msk [vmem:[#allocation3] sm:$0xff] %vm250_vm0, %v298_v37 }
 0x19f   : > { %v313_v39 = vpop.xlane.xlu1 %312 }
 0x1a0   : > { %v314_v40 = vadd.f32 %v313_v39, %v309_v38 }
 0x1a1   : > { %v328_v41 = vld [vmem:[#allocation3] sm:$0xff] }
 0x1a2   : > { %523 = vlog2.f32 %v328_v41  ;;  %315 = vst.msk [vmem:[#allocation4] sm:$0xff] %vm250_vm0, %v314_v40 }
 0x1a8   : > { %v524_v42 = vpop.eup %523 }
 0x1a9   : > { %v330_v43 = vmul.f32 0.6931472, %v524_v42  ;;  %v332_v45 = vld [vmem:[#allocation4] sm:$0xff] }
 0x1ab   : > { %v331_v46 = vadd.f32 %v330_v43, %v327_v44 }
 0x1ad   : > { %v333_v48 = vmul.f32 %v332_v45, %v331_v46 }
 0x1af   : > { %v335_v49 = vsub.f32 %v333_v48, %v334_v47 }
 0x1b1   : > { %v337_v50 = vand.u32 2147483647, %v335_v49  ;;  %vm336_vm1 = vcmp.ne.f32.partialorder %v335_v49, %v335_v49 }
 0x1b3   : > { %vm338_vm2 = vcmp.eq.f32.partialorder %v337_v50, inf }
 0x1b4   : > { %vm339_vm3 = vmor %vm336_vm1, %vm338_vm2 }
 0x1b5   : > { %v340_v51 = vsel %vm339_vm3, 0.0, %v335_v49 }
 0x1b6   : > { %341 = vst.msk [vmem:[%s245_s5] sm:$0xff] %vm250_vm0, %v340_v51 }
 0x1b7 PF: > { %s20_s19 = sadd.s32 1, %s639_s19   ;;  %s784_s14 = smov %s623_s15 }
 0x1b8   : > { %p17_p0 = scmp.ge.s32.totalorder %s20_s19, 4   ;;  %s785_s15 = smov %s627_s16 }
 0x1b9   : > { %s786_s16 = smov %s717_s25  ;;  %s787_s17 = smov %s635_s18 }
 0x1ba   : > { %s788_s18 = smov %s790_s20  ;;  %19 = sbr.rel (!%p17_p0) target bundleno = 8 (0x8), region = 93 }
 0x1bf   :  { %361 = vsyncpa [#allocation8], 1 }
 0x1c0   :  { %363 = vsyncpa [#allocation8 + $0x1], 1 }
 0x1c1   :  { %364 = vsyncpa [#allocation10], 1 }
 0x1c2   :  { %366 = vsyncpa [#allocation10 + $0x1], 1 }

</bundles_post_ra>
